<compile_context>
chip_gen: v6e
topology: v6e:2x2x1
jax: 0.10.0
libtpu: 0.0.40
codegen_flags: <defaults>
</compile_context>

<pallas_src>
import functools

import jax
import jax.numpy as jnp
from jax import lax
from jax.experimental import pallas as pl
from jax.experimental.pallas import tpu as pltpu


def _mca_kernel(x_ref, wq_ref, bq_ref, wk_ref, bk_ref, wv_ref, bv_ref,
                wo_ref, bo_ref, mask_ref, o_ref, *,
                anchor_start, anchor_cols, approx_softmax):
    """One batch element per grid step.  x_ref / o_ref blocks are (C, HW)."""
    mm_dtype = wk_ref.dtype             # MXU operand dtype (f32 or bf16)

    xm = x_ref[...].astype(mm_dtype)                           # (C, HW)
    anchor = xm[anchor_start:anchor_start + anchor_cols, :]    # (cg or C, HW)

    # 1x1 convs == channel-mixing MXU matmuls (+ f32 bias).  The torch
    # x_anchor.repeat(1, input_num, 1, 1) is pre-folded into the Q weight.
    q = jnp.dot(wq_ref[...], anchor,
                preferred_element_type=jnp.float32) + bq_ref[...]
    k = jnp.dot(wk_ref[...], xm,
                preferred_element_type=jnp.float32) + bk_ref[...]
    v = jnp.dot(wv_ref[...], xm,
                preferred_element_type=jnp.float32) + bv_ref[...]

    # F.normalize(dim=-1): x * rsqrt(max(sum(x^2), eps^2))  (EUP rsqrt).
    eps2 = jnp.float32(1e-24)           # (F.normalize eps=1e-12)**2
    qn = q * lax.rsqrt(jnp.maximum(
        jnp.sum(q * q, axis=-1, keepdims=True), eps2))
    kn = k * lax.rsqrt(jnp.maximum(
        jnp.sum(k * k, axis=-1, keepdims=True), eps2))

    # One full-C attention matmul; the additive block-diagonal mask (applied
    # BEFORE softmax) makes each row normalize only over its own head's cols.
    attn = lax.dot_general(
        qn.astype(mm_dtype), kn.astype(mm_dtype),
        dimension_numbers=(((1,), (1,)), ((), ())),
        preferred_element_type=jnp.float32) + mask_ref[...]    # (C, C)
    m = jnp.max(attn, axis=-1, keepdims=True)
    e = jnp.exp(attn - m)
    s = jnp.sum(e, axis=-1, keepdims=True)
    if approx_softmax:
        p = e * pl.reciprocal(s, approx=True)                  # EUP vrcp
    else:
        p = e / s

    # Fused project_out:  wo @ (p @ v) == (wo @ p) @ v.
    wp = jnp.dot(wo_ref[...], p.astype(mm_dtype),
                 preferred_element_type=jnp.float32)            # (C, C)
    out = jnp.dot(wp.astype(mm_dtype), v.astype(mm_dtype),
                  preferred_element_type=jnp.float32) + bo_ref[...]
    o_ref[...] = out.astype(o_ref.dtype)


def _vmem_capacity_bytes():
    """Physical VMEM of the attached TPU; conservative (v7x) fallback."""
    try:
        info = pltpu.get_tpu_info()
        for name in ("vmem_capacity_bytes", "vmem_size_bytes", "vmem_bytes"):
            val = getattr(info, name, None)
            if val:
                return int(val)
    except Exception:
        pass
    return 64 * 2**20


def multihead_channel_attention(x, params, *, input_num, num_heads,
                                matmul_dtype=jnp.bfloat16,
                                out_dtype=jnp.float32,
                                approx_softmax=True):
    """x: (B, C, H, W).  params: (C, C) 1x1-conv weights and (C, 1) biases."""
    B, C, H, W = x.shape
    HW = H * W
    heads = num_heads * input_num
    assert C % heads == 0 and C % input_num == 0
    cg = C // input_num
    start = (input_num // 2) * cg

    # Natural layout: (B, C, HW) -- a free reshape, no host transpose passes.
    x3 = x.reshape(B, C, HW)

    # Fold the anchor repeat into the Q weight:
    #   wq @ tile(anchor) == (sum_g wq[:, g*cg:(g+1)*cg]) @ anchor
    wq_folded = params["wq"].reshape(C, input_num, cg).sum(axis=1)   # (C, cg)
    if start % 8 == 0 and cg % 8 == 0:
        anchor_start, anchor_cols = start, cg      # zero-cost sublane slice
        wq_use = wq_folded
    else:
        # A misaligned sublane slice would force relayouts; embed the folded
        # weight into a zero-padded (C, C) matrix and contract over all C.
        anchor_start, anchor_cols = 0, C
        wq_use = jnp.zeros((C, C), wq_folded.dtype).at[
            :, start:start + cg].set(wq_folded)

    # Block-diagonal additive softmax mask (row/col in the same head).
    cph = C // heads
    row_h = jnp.arange(C, dtype=jnp.int32)[:, None] // cph
    col_h = jnp.arange(C, dtype=jnp.int32)[None, :] // cph
    mask = jnp.where(row_h == col_h, 0.0, -1e30).astype(jnp.float32)

    mmd = jnp.dtype(matmul_dtype)
    odt = jnp.dtype(out_dtype)
    f32 = jnp.float32
    wq_use = wq_use.astype(mmd)
    wk = params["wk"].astype(mmd)
    wv = params["wv"].astype(mmd)
    wo = params["wo"].astype(mmd)
    bq = params["bq"].astype(f32)
    bk = params["bk"].astype(f32)
    bv = params["bv"].astype(f32)
    bo = params["bo"].astype(f32)

    # Generation-aware VMEM budget: <=80% of physical VMEM (~51 MiB on v7x,
    # ~102 MiB on v5e/v6e); estimate counts double-buffered weights/bias/mask.
    blk = C * HW
    w_bytes = ((anchor_cols * C + 3 * C * C) * mmd.itemsize   # conv weights
               + C * C * 4                                    # mask (f32)
               + 4 * C * 4)                                   # biases (f32)
    est = (2 * blk * x3.dtype.itemsize      # input block, double buffered
           + 2 * blk * odt.itemsize         # output block, double buffered
           + 8 * blk * 4                    # live f32 q/k/v/qn/kn/out ...
           + 4 * C * C * 4                  # attn / e / p / wp
           + 2 * w_bytes)                   # weights, double buffered
    vmem_limit = int(min(int(0.80 * _vmem_capacity_bytes()),
                         max(32 * 2**20, int(1.5 * est))))

    kernel = functools.partial(
        _mca_kernel, anchor_start=anchor_start, anchor_cols=anchor_cols,
        approx_softmax=approx_softmax)
    bmap = lambda b: (b, 0, 0)
    wmap = lambda b: (0, 0)

    out = pl.pallas_call(
        kernel,
        out_shape=jax.ShapeDtypeStruct((B, C, HW), odt),
        grid=(B,),
        in_specs=[
            pl.BlockSpec((None, C, HW), bmap),                        # x
            pl.BlockSpec((C, anchor_cols), wmap),                     # wq fold
            pl.BlockSpec((C, 1), wmap),                               # bq
            pl.BlockSpec((C, C), wmap), pl.BlockSpec((C, 1), wmap),   # wk, bk
            pl.BlockSpec((C, C), wmap), pl.BlockSpec((C, 1), wmap),   # wv, bv
            pl.BlockSpec((C, C), wmap), pl.BlockSpec((C, 1), wmap),   # wo, bo
            pl.BlockSpec((C, C), wmap),                               # mask
        ],
        out_specs=pl.BlockSpec((None, C, HW), bmap),
        compiler_params=pltpu.CompilerParams(
            dimension_semantics=("parallel",),
            vmem_limit_bytes=vmem_limit),
    )(x3, wq_use, bq, wk, bk, wv, bv, wo, bo, mask)

    return out.reshape(B, C, H, W)


def _reference(x, params, *, input_num, num_heads):
    """Pure-JAX reference mirroring the PyTorch forward exactly."""
    b, c, h, w = x.shape
    cg = c // input_num
    anchor = x[:, (input_num // 2) * cg:(input_num // 2 + 1) * cg]
    y = jnp.tile(anchor, (1, input_num, 1, 1))

    def conv1x1(wmat, bvec, inp):
        return jnp.einsum('oi,bihw->bohw', wmat, inp) + bvec[None, :, 0, None, None]

    q = conv1x1(params["wq"], params["bq"], y)
    k = conv1x1(params["wk"], params["bk"], x)
    v = conv1x1(params["wv"], params["bv"], x)

    heads = num_heads * input_num
    cph = c // heads
    q = q.reshape(b, heads, cph, h * w)
    k = k.reshape(b, heads, cph, h * w)
    v = v.reshape(b, heads, cph, h * w)

    eps = 1e-12
    q = q / jnp.maximum(jnp.linalg.norm(q, axis=-1, keepdims=True), eps)
    k = k / jnp.maximum(jnp.linalg.norm(k, axis=-1, keepdims=True), eps)

    attn = jnp.einsum('bhcp,bhdp->bhcd', q, k)
    attn = jax.nn.softmax(attn, axis=-1)
    out = jnp.einsum('bhcd,bhdp->bhcp', attn, v)
    out = out.reshape(b, c, h, w)
    return conv1x1(params["wo"], params["bo"], out)


if __name__ == "__main__":
    B, C, H, W = 2, 16, 16, 16
    num_heads = 2
    input_num = 2            # C must be divisible by num_heads * input_num

    key = jax.random.PRNGKey(0)
    keys = jax.random.split(key, 9)
    x = jax.random.normal(keys[0], (B, C, H, W), dtype=jnp.float32)

    w_init = lambda k: 0.1 * jax.random.normal(k, (C, C), dtype=jnp.float32)
    b_init = lambda k: 0.05 * jax.random.normal(k, (C, 1), dtype=jnp.float32)
    params = {
        "wq": w_init(keys[1]), "bq": b_init(keys[2]),
        "wk": w_init(keys[3]), "bk": b_init(keys[4]),
        "wv": w_init(keys[5]), "bv": b_init(keys[6]),
        "wo": w_init(keys[7]), "bo": b_init(keys[8]),
    }

    ref = _reference(x, params, input_num=input_num, num_heads=num_heads)

    # f32 matmul / f32 output path: tight check (only deviations from the
    # reference are the rsqrt normalize and the approx softmax reciprocal).
    out_f32 = multihead_channel_attention(
        x, params, input_num=input_num, num_heads=num_heads,
        matmul_dtype=jnp.float32, out_dtype=jnp.float32)
    out_f32 = jax.block_until_ready(out_f32)
    assert out_f32.shape == (B, C, H, W)
    assert jnp.allclose(out_f32, ref, rtol=5e-3, atol=5e-3), \
        float(jnp.max(jnp.abs(out_f32 - ref)))

    # Production fast path: bf16 input / MXU operands / output (halves HBM
    # traffic in the memory-bound regime).  Looser, norm-based check.
    out_bf16 = multihead_channel_attention(
        x.astype(jnp.bfloat16), params, input_num=input_num,
        num_heads=num_heads, matmul_dtype=jnp.bfloat16,
        out_dtype=jnp.bfloat16)
    out_bf16 = jax.block_until_ready(out_bf16).astype(jnp.float32)
    rel_err = float(jnp.linalg.norm(out_bf16 - ref) / jnp.linalg.norm(ref))
    assert rel_err < 5e-2, rel_err

    print("KERNEL_OK")
</pallas_src>

<mosaic_0001>
module attributes {stable_mosaic.version = 11 : i64} {
  func.func @_mca_kernel(%arg0: i32, %arg1: memref<1x16x256xf32, #tpu.memory_space<vmem>>, %arg2: memref<16x8xf32, #tpu.memory_space<vmem>>, %arg3: memref<16x1xf32, #tpu.memory_space<vmem>>, %arg4: memref<16x16xf32, #tpu.memory_space<vmem>>, %arg5: memref<16x1xf32, #tpu.memory_space<vmem>>, %arg6: memref<16x16xf32, #tpu.memory_space<vmem>>, %arg7: memref<16x1xf32, #tpu.memory_space<vmem>>, %arg8: memref<16x16xf32, #tpu.memory_space<vmem>>, %arg9: memref<16x1xf32, #tpu.memory_space<vmem>>, %arg10: memref<16x16xf32, #tpu.memory_space<vmem>>, %arg11: memref<1x16x256xf32, #tpu.memory_space<vmem>>) attributes {dimension_semantics = [#tpu.dimension_semantics<parallel>], iteration_bounds = array<i64: 2>, scalar_prefetch = 0 : i64, scratch_operands = 0 : i64, tpu.core_type = #tpu.core_type<tc>, window_params = [{transform_indices = @transform_0, window_bounds = array<i64: 1, 16, 256>}, {pipeline_mode = #tpu.pipeline_mode<synchronous>, transform_indices = @transform_1, window_bounds = array<i64: 16, 8>}, {pipeline_mode = #tpu.pipeline_mode<synchronous>, transform_indices = @transform_2, window_bounds = array<i64: 16, 1>}, {pipeline_mode = #tpu.pipeline_mode<synchronous>, transform_indices = @transform_3, window_bounds = array<i64: 16, 16>}, {pipeline_mode = #tpu.pipeline_mode<synchronous>, transform_indices = @transform_4, window_bounds = array<i64: 16, 1>}, {pipeline_mode = #tpu.pipeline_mode<synchronous>, transform_indices = @transform_5, window_bounds = array<i64: 16, 16>}, {pipeline_mode = #tpu.pipeline_mode<synchronous>, transform_indices = @transform_6, window_bounds = array<i64: 16, 1>}, {pipeline_mode = #tpu.pipeline_mode<synchronous>, transform_indices = @transform_7, window_bounds = array<i64: 16, 16>}, {pipeline_mode = #tpu.pipeline_mode<synchronous>, transform_indices = @transform_8, window_bounds = array<i64: 16, 1>}, {pipeline_mode = #tpu.pipeline_mode<synchronous>, transform_indices = @transform_9, window_bounds = array<i64: 16, 16>}, {transform_indices = @transform_10, window_bounds = array<i64: 1, 16, 256>}]} {
    %c0 = arith.constant 0 : index
    %c0_0 = arith.constant 0 : index
    %c0_1 = arith.constant 0 : index
    %0 = vector.load %arg1[%c0, %c0_0, %c0_1] : memref<1x16x256xf32, #tpu.memory_space<vmem>>, vector<1x16x256xf32>
    %1 = vector.shape_cast %0 : vector<1x16x256xf32> to vector<16x256xf32>
    %2 = vector.extract_strided_slice %1 {offsets = [8, 0], sizes = [8, 256], strides = [1, 1]} : vector<16x256xf32> to vector<8x256xf32>
    %c0_2 = arith.constant 0 : index
    %c0_3 = arith.constant 0 : index
    %3 = vector.load %arg2[%c0_2, %c0_3] : memref<16x8xf32, #tpu.memory_space<vmem>>, vector<16x8xf32>
    %cst = arith.constant dense<0.000000e+00> : vector<16x256xf32>
    %4 = tpu.matmul %3, %2, %cst {dimension_numbers = #tpu.dot_dimension_numbers<[1], [0], [0], [1], [0, 0, 1, 1], [], []>} : vector<16x8xf32>, vector<8x256xf32>, vector<16x256xf32> -> vector<16x256xf32>
    %c0_4 = arith.constant 0 : index
    %c0_5 = arith.constant 0 : index
    %5 = vector.load %arg3[%c0_4, %c0_5] : memref<16x1xf32, #tpu.memory_space<vmem>>, vector<16x1xf32>
    %6 = vector.broadcast %5 : vector<16x1xf32> to vector<16x256xf32>
    %7 = arith.addf %4, %6 : vector<16x256xf32>
    %c0_6 = arith.constant 0 : index
    %c0_7 = arith.constant 0 : index
    %8 = vector.load %arg4[%c0_6, %c0_7] : memref<16x16xf32, #tpu.memory_space<vmem>>, vector<16x16xf32>
    %cst_8 = arith.constant dense<0.000000e+00> : vector<16x256xf32>
    %9 = tpu.matmul %8, %1, %cst_8 {dimension_numbers = #tpu.dot_dimension_numbers<[1], [0], [0], [1], [0, 0, 1, 1], [], []>} : vector<16x16xf32>, vector<16x256xf32>, vector<16x256xf32> -> vector<16x256xf32>
    %c0_9 = arith.constant 0 : index
    %c0_10 = arith.constant 0 : index
    %10 = vector.load %arg5[%c0_9, %c0_10] : memref<16x1xf32, #tpu.memory_space<vmem>>, vector<16x1xf32>
    %11 = vector.broadcast %10 : vector<16x1xf32> to vector<16x256xf32>
    %12 = arith.addf %9, %11 : vector<16x256xf32>
    %c0_11 = arith.constant 0 : index
    %c0_12 = arith.constant 0 : index
    %13 = vector.load %arg6[%c0_11, %c0_12] : memref<16x16xf32, #tpu.memory_space<vmem>>, vector<16x16xf32>
    %cst_13 = arith.constant dense<0.000000e+00> : vector<16x256xf32>
    %14 = tpu.matmul %13, %1, %cst_13 {dimension_numbers = #tpu.dot_dimension_numbers<[1], [0], [0], [1], [0, 0, 1, 1], [], []>} : vector<16x16xf32>, vector<16x256xf32>, vector<16x256xf32> -> vector<16x256xf32>
    %c0_14 = arith.constant 0 : index
    %c0_15 = arith.constant 0 : index
    %15 = vector.load %arg7[%c0_14, %c0_15] : memref<16x1xf32, #tpu.memory_space<vmem>>, vector<16x1xf32>
    %16 = vector.broadcast %15 : vector<16x1xf32> to vector<16x256xf32>
    %17 = arith.addf %14, %16 : vector<16x256xf32>
    %18 = arith.mulf %7, %7 : vector<16x256xf32>
    %cst_16 = arith.constant dense<0.000000e+00> : vector<16xf32>
    %19 = vector.multi_reduction <add>, %18, %cst_16 [1] : vector<16x256xf32> to vector<16xf32>
    %20 = vector.shape_cast %19 : vector<16xf32> to vector<16x1xf32>
    %cst_17 = arith.constant 1.000000e-24 : f32
    %21 = vector.broadcast %cst_17 : f32 to vector<16x1xf32>
    %22 = arith.maximumf %20, %21 : vector<16x1xf32>
    %23 = math.rsqrt %22 : vector<16x1xf32>
    %24 = vector.broadcast %23 : vector<16x1xf32> to vector<16x256xf32>
    %25 = arith.mulf %7, %24 : vector<16x256xf32>
    %26 = arith.mulf %12, %12 : vector<16x256xf32>
    %cst_18 = arith.constant dense<0.000000e+00> : vector<16xf32>
    %27 = vector.multi_reduction <add>, %26, %cst_18 [1] : vector<16x256xf32> to vector<16xf32>
    %28 = vector.shape_cast %27 : vector<16xf32> to vector<16x1xf32>
    %cst_19 = arith.constant 1.000000e-24 : f32
    %29 = vector.broadcast %cst_19 : f32 to vector<16x1xf32>
    %30 = arith.maximumf %28, %29 : vector<16x1xf32>
    %31 = math.rsqrt %30 : vector<16x1xf32>
    %32 = vector.broadcast %31 : vector<16x1xf32> to vector<16x256xf32>
    %33 = arith.mulf %12, %32 : vector<16x256xf32>
    %cst_20 = arith.constant dense<0.000000e+00> : vector<16x16xf32>
    %34 = tpu.matmul %25, %33, %cst_20 {dimension_numbers = #tpu.dot_dimension_numbers<[1], [1], [0], [0], [0, 0, 1, 0], [], []>} : vector<16x256xf32>, vector<16x256xf32>, vector<16x16xf32> -> vector<16x16xf32>
    %c0_21 = arith.constant 0 : index
    %c0_22 = arith.constant 0 : index
    %35 = vector.load %arg10[%c0_21, %c0_22] : memref<16x16xf32, #tpu.memory_space<vmem>>, vector<16x16xf32>
    %36 = arith.addf %34, %35 : vector<16x16xf32>
    %cst_23 = arith.constant dense<0xFF800000> : vector<16xf32>
    %37 = vector.multi_reduction <maximumf>, %36, %cst_23 [1] : vector<16x16xf32> to vector<16xf32>
    %38 = vector.shape_cast %37 : vector<16xf32> to vector<16x1xf32>
    %39 = vector.broadcast %38 : vector<16x1xf32> to vector<16x16xf32>
    %40 = arith.subf %36, %39 : vector<16x16xf32>
    %41 = math.exp %40 : vector<16x16xf32>
    %cst_24 = arith.constant dense<0.000000e+00> : vector<16xf32>
    %42 = vector.multi_reduction <add>, %41, %cst_24 [1] : vector<16x16xf32> to vector<16xf32>
    %43 = vector.shape_cast %42 : vector<16xf32> to vector<16x1xf32>
    %44 = tpu.reciprocal %43 {approx = true} : vector<16x1xf32> -> vector<16x1xf32>
    %45 = vector.broadcast %44 : vector<16x1xf32> to vector<16x16xf32>
    %46 = arith.mulf %41, %45 : vector<16x16xf32>
    %c0_25 = arith.constant 0 : index
    %c0_26 = arith.constant 0 : index
    %47 = vector.load %arg8[%c0_25, %c0_26] : memref<16x16xf32, #tpu.memory_space<vmem>>, vector<16x16xf32>
    %cst_27 = arith.constant dense<0.000000e+00> : vector<16x16xf32>
    %48 = tpu.matmul %47, %46, %cst_27 {dimension_numbers = #tpu.dot_dimension_numbers<[1], [0], [0], [1], [0, 0, 1, 1], [], []>} : vector<16x16xf32>, vector<16x16xf32>, vector<16x16xf32> -> vector<16x16xf32>
    %cst_28 = arith.constant dense<0.000000e+00> : vector<16x256xf32>
    %49 = tpu.matmul %48, %17, %cst_28 {dimension_numbers = #tpu.dot_dimension_numbers<[1], [0], [0], [1], [0, 0, 1, 1], [], []>} : vector<16x16xf32>, vector<16x256xf32>, vector<16x256xf32> -> vector<16x256xf32>
    %c0_29 = arith.constant 0 : index
    %c0_30 = arith.constant 0 : index
    %50 = vector.load %arg9[%c0_29, %c0_30] : memref<16x1xf32, #tpu.memory_space<vmem>>, vector<16x1xf32>
    %51 = vector.broadcast %50 : vector<16x1xf32> to vector<16x256xf32>
    %52 = arith.addf %49, %51 : vector<16x256xf32>
    %c0_31 = arith.constant 0 : index
    %c0_32 = arith.constant 0 : index
    %c0_33 = arith.constant 0 : index
    %53 = vector.load %arg11[%c0_31, %c0_32, %c0_33] : memref<1x16x256xf32, #tpu.memory_space<vmem>>, vector<1x16x256xf32>
    %54 = vector.shape_cast %53 : vector<1x16x256xf32> to vector<16x256xf32>
    %55 = vector.shape_cast %52 : vector<16x256xf32> to vector<1x16x256xf32>
    tpu.vector_store %arg11[%c0_31, %c0_32, %c0_33], %55 {strides = array<i32>} : memref<1x16x256xf32, #tpu.memory_space<vmem>>, vector<1x16x256xf32>,
    return
  }
  func.func @transform_0(%arg0: i32) -> (i32, i32, i32) {
    %c0_i32 = arith.constant 0 : i32
    %c0_i32_0 = arith.constant 0 : i32
    %c0_i32_1 = arith.constant 0 : i32
    return %arg0, %c0_i32, %c0_i32_0 : i32, i32, i32
  }
  func.func @transform_1(%arg0: i32) -> (i32, i32) {
    %c0_i32 = arith.constant 0 : i32
    %c0_i32_0 = arith.constant 0 : i32
    %c0_i32_1 = arith.constant 0 : i32
    return %c0_i32, %c0_i32_0 : i32, i32
  }
  func.func @transform_2(%arg0: i32) -> (i32, i32) {
    %c0_i32 = arith.constant 0 : i32
    %c0_i32_0 = arith.constant 0 : i32
    %c0_i32_1 = arith.constant 0 : i32
    return %c0_i32, %c0_i32_0 : i32, i32
  }
  func.func @transform_3(%arg0: i32) -> (i32, i32) {
    %c0_i32 = arith.constant 0 : i32
    %c0_i32_0 = arith.constant 0 : i32
    %c0_i32_1 = arith.constant 0 : i32
    return %c0_i32, %c0_i32_0 : i32, i32
  }
  func.func @transform_4(%arg0: i32) -> (i32, i32) {
    %c0_i32 = arith.constant 0 : i32
    %c0_i32_0 = arith.constant 0 : i32
    %c0_i32_1 = arith.constant 0 : i32
    return %c0_i32, %c0_i32_0 : i32, i32
  }
  func.func @transform_5(%arg0: i32) -> (i32, i32) {
    %c0_i32 = arith.constant 0 : i32
    %c0_i32_0 = arith.constant 0 : i32
    %c0_i32_1 = arith.constant 0 : i32
    return %c0_i32, %c0_i32_0 : i32, i32
  }
  func.func @transform_6(%arg0: i32) -> (i32, i32) {
    %c0_i32 = arith.constant 0 : i32
    %c0_i32_0 = arith.constant 0 : i32
    %c0_i32_1 = arith.constant 0 : i32
    return %c0_i32, %c0_i32_0 : i32, i32
  }
  func.func @transform_7(%arg0: i32) -> (i32, i32) {
    %c0_i32 = arith.constant 0 : i32
    %c0_i32_0 = arith.constant 0 : i32
    %c0_i32_1 = arith.constant 0 : i32
    return %c0_i32, %c0_i32_0 : i32, i32
  }
  func.func @transform_8(%arg0: i32) -> (i32, i32) {
    %c0_i32 = arith.constant 0 : i32
    %c0_i32_0 = arith.constant 0 : i32
    %c0_i32_1 = arith.constant 0 : i32
    return %c0_i32, %c0_i32_0 : i32, i32
  }
  func.func @transform_9(%arg0: i32) -> (i32, i32) {
    %c0_i32 = arith.constant 0 : i32
    %c0_i32_0 = arith.constant 0 : i32
    %c0_i32_1 = arith.constant 0 : i32
    return %c0_i32, %c0_i32_0 : i32, i32
  }
  func.func @transform_10(%arg0: i32) -> (i32, i32, i32) {
    %c0_i32 = arith.constant 0 : i32
    %c0_i32_0 = arith.constant 0 : i32
    %c0_i32_1 = arith.constant 0 : i32
    return %arg0, %c0_i32, %c0_i32_0 : i32, i32, i32
  }
}

</mosaic_0001>

<bundles_post_ra>
// kernel: tpu_custom_call.1
= control target key start
LH: loop header
LB: loop body
LE: loop exit
PB: predicated region body
PF: predicated region fallthrough
CT: control target
= control target key end

     0   :  { %15 = vsyncpa [#allocation3], 0  ;;  %s1620_s0 = inlined_call_operand.vmem [shape: f32[2,16,256], index: 0, kind: input, shape index: {}]   ;;  %s1621_s1 = inlined_call_operand.vmem [shape: f32[16,8], index: 1, kind: input, shape index: {}]   ;;  %s1622_s2 = inlined_call_operand.vmem [shape: f32[16,1], index: 2, kind: input, shape index: {}]   ;;  %s1623_s3 = inlined_call_operand.vmem [shape: f32[16,16], index: 3, kind: input, shape index: {}]   ;;  %s1624_s4 = inlined_call_operand.vmem [shape: f32[16,1], index: 4, kind: input, shape index: {}]   ;;  %s1625_s5 = inlined_call_operand.vmem [shape: f32[16,16], index: 5, kind: input, shape index: {}]   ;;  %s1626_s6 = inlined_call_operand.vmem [shape: f32[16,1], index: 6, kind: input, shape index: {}]   ;;  %s1627_s7 = inlined_call_operand.hbm [shape: f32[16,16], index: 7, kind: input, shape index: {}]   ;;  %s1628_s8 = inlined_call_operand.vmem [shape: f32[16,1], index: 8, kind: input, shape index: {}]   ;;  %s1629_s9 = inlined_call_operand.hbm [shape: f32[16,16], index: 9, kind: input, shape index: {}]   ;;  %s1630_s10 = inlined_call_operand.hbm [shape: f32[2,16,256], index: 10, kind: output, shape index: {}]  }
   0x1   :  { %16 = vsyncpa [#allocation6], 0 }
   0x2   :  { %17 = vsyncpa [#allocation4], 0 }
   0x3   :  { %19 = vsyncpa [#allocation4 + $0x1], 0  ;;  %s1413_s13 = smov 0   ;;  %s1415_s14 = smov 0  }
   0x4   :  { %s1417_s15 = smov 0   ;;  %s1419_s16 = smov 0  }
   0x5 LB: > { %s1434_s17 = sadd.s32 4294967295, %s1347_s16   ;;  %s1100_s18 = sadd.s32 4294967294, %s1347_s16   ;;  %s1347_s16 = sphi %s1419_s16, %s1644_s16   ;;  %s1343_s15 = sphi %s1417_s15, %s1643_s15   ;;  %s1339_s14 = sphi %s1415_s14, %s1642_s14   ;;  %s1335_s13 = sphi %s1413_s13, %s1641_s13  }
   0x6   : > { %s1438_s19 = sadd.s32 1, %s1347_s16   ;;  %s247_s20 = sadd.s32 1, %s1343_s15 }
   0x7   : > { %s244_s21 = ssub.s32 %s1347_s16, %s1438_s19  ;;  %p257_p0 = scmp.ne.s32.totalorder %s1343_s15, %s1339_s14 }
   0x8   : > { %p245_p1 = scmp.eq.s32.totalorder %s244_s21, 0  ;;  %p258_p2 = scmp.eq.s32.totalorder %s1434_s17, 1 }
   0x9   : > { %p263_p3 = scmp.ne.s32.totalorder %s1339_s14, %s1335_s13  ;;  %p264_p4 = scmp.eq.s32.totalorder %s1100_s18, 1 }
   0xa   : > { %s1449_s22 = scalar_select %p245_p1, %s1343_s15, %s247_s20  }
   0xb   : > { %p1451_p5 = por %p258_p2, %p257_p0  ;;  %p1455_p6 = por %p264_p4, %p263_p3 }
   0xc   : > { %p1101_p7 = scmp.ge.s32.totalorder %s1347_s16, 1  ;;  %p271_p8 = scmp.lt.s32.totalorder %s1347_s16, 3 }
   0xd   : > { %s1633_s24 = scalar_select %p1455_p6, 1, 0 }
   0xe   : > { %p1631_p9 = scmp.eq.s32.totalorder %s1434_s17, 0  ;;  %p1462_p10 = pnand %p1101_p7, %p271_p8 }
   0xf   : > { %s1349_s26 = smov [#allocation2]   ;;  %s1350_s29 = smov [#allocation5]  }
  0x10   : > { %s301_s27 = sshll.u32 %s1349_s26, 4  ;;  %p1153_p11 = pneg %p1462_p10  ;;  %s302_s27 = int_to_ptr.vmem [resolvable:$true] %s301_s27 }
  0x11   : > { %s317_s30 = sshll.u32 %s1350_s29, 4  ;;  %s1238_s11 = scalar_lea.vmem %s302_s27, 256  ;;  %s318_s30 = int_to_ptr.vmem [resolvable:$true] %s317_s30 }
  0x12   : > { %p1470_p12 = pnand %p1631_p9, %p1153_p11  ;;  %p1239_p0 = scmp.ne.s32.totalorder %s302_s27, %s1238_s11 }
  0x13   : > { %p1246_p3 = scmp.lt.s32.totalorder %s302_s27, %s302_s27  ;;  %p1247_p4 = scmp.lt.s32.totalorder %s1238_s11, %s1238_s11 }
  0x14   : > { %p1229_p13 = pneg %p1470_p12 }
  0x15   : > { %p1248_p7 = por %p1247_p4, %p1246_p3 }
  0x16   : > { %p1241_p1 = pnand %p1239_p0, %p1229_p13 }
  0x18   : > { %p1242_p2 = pneg %p1241_p1 }
  0x1a   : > { %p1249_p8 = pnand %p1248_p7, %p1242_p2 }
  0x1c   : > { %1252 = shalt.err (!%p1249_p8)
}
  0x1d   : > { %s1351_s12 = smov 128   ;;  %s1352_s18 = smov 8  }
  0x1e   : > { %1156 = dma.hbm_to_vmem [thread:$0]  (!%p1470_p12), %s1627_s7, 256, %s302_s27, [#allocation3], %s1351_s12, %s1351_s12, %s1352_s18  }
  0x1f   : > { %s1264_s26 = scalar_lea.vmem %s318_s30, 256  ;;  %p1272_p9 = scmp.lt.s32.totalorder %s318_s30, %s318_s30 }
  0x20   : > { %p1265_p11 = scmp.ne.s32.totalorder %s318_s30, %s1264_s26  ;;  %p1273_p6 = scmp.lt.s32.totalorder %s1264_s26, %s1264_s26 }
  0x22   : > { %p1267_p0 = pnand %p1265_p11, %p1229_p13  ;;  %p1274_p3 = por %p1273_p6, %p1272_p9 }
  0x24   : > { %p1268_p1 = pneg %p1267_p0 }
  0x26   : > { %p1275_p2 = pnand %p1274_p3, %p1268_p1 }
  0x28   : > { %1278 = shalt.err (!%p1275_p2)
}
  0x29   : > { %1159 = dma.hbm_to_vmem [thread:$0]  (!%p1470_p12), %s1629_s9, 256, %s318_s30, [#allocation6], %s1351_s12, %s1351_s12, %s1352_s18  }
  0x2a   : > { %341 = sbr.rel (%p1462_p10) target bundleno = 1352 (0x548), region = 60  ;;  %p1636_p4 = scmp.eq.s32.totalorder (!%p1462_p10), %s1434_s17, 0 }
  0x2f   : > { %1322 = dma.done.wait (%p1636_p4), [#allocation3], 256   ;;  %p1637_p13 = pmov %p1636_p4 }
  0x30   : > { %p1638_p7 = pmov %p1636_p4 }
  0x31   : > { %1324 = vsyncadd (%p1637_p13), [#allocation3], 4294967040 }
  0x32   : > { %1326 = dma.done.wait (%p1638_p7), [#allocation6], 256   ;;  %p1639_p6 = pmov %p1636_p4 }
  0x33   : > { %p383_p9 = scmp.lt.s32.totalorder %s1434_s17, 1  ;;  %v1353_v0 = vmov 0.0   ;;  %v1354_v1 = vmov 0   ;;  %vm406_vm0 = vcmask 64512   ;;  %v392_v6 = vld [vmem:[%s1621_s1] sm:$0xff]  ;;  %vm504_vm1 = vcmask 130048  }
  0x34   : > { %1328 = vsyncadd (%p1639_p6), [#allocation6], 4294967040  ;;  %575 = vmatprep.mubr.f32.mxu1 %v1353_v0  ;;  %477 = vmatprep.mubr.f32.mxu0 %v1353_v0  ;;  %v490_v7 = vld [vmem:[%s1623_s3] sm:$0xff]  ;;  %v493_v8 = vld [vmem:[%s1624_s4 + $0x8] sm:$0xff]  ;;  %s1355_s29 = smov [#allocation7]  }
  0x35   : > { %s384_s25 = scalar_select %p383_p9, %s1434_s17, 1  ;;  %1209 = vset.pattern.permute.xlu0 %v1354_v1  ;;  %1210 = vset.pattern.permute.xlu1 %v1354_v1  ;;  %v395_v9 = vld [vmem:[%s1622_s2 + $0x8] sm:$0xff]  ;;  %v492_v12 = vld [vmem:[%s1624_s4] sm:$0xff] }
  0x36   : > { %v393_v10 = vld [vmem:[%s1621_s1 + $0x8] sm:$0xff]  ;;  %501 = vperm.xlu0 %1209, %v493_v8   ;;  %403 = vperm.xlu1 %1210, %v395_v9   ;;  %v394_v13 = vld [vmem:[%s1622_s2] sm:$0xff]  ;;  %v722_v9 = vld [vmem:[#allocation5 + $0x8] sm:$0xff]  ;;  %s1283_s11 = sshll.u32 %s1355_s29, 4  ;;  %s1284_s11 = int_to_ptr.vmem [resolvable:$false] %s1283_s11 }
  0x37   : > { %s1126_s27 = sshll.u32 %s384_s25, 5  ;;  %v491_v11 = vld [vmem:[%s1623_s3 + $0x8] sm:$0xff]  ;;  %v588_v46 = vld [vmem:[%s1625_s5] sm:$0xff]  ;;  %s380_s25 = sand.u32 1, %s1339_s14  }
  0x38   : > { %s387_s12 = scalar_lea.vmem %s1620_s0, %s1126_s27  ;;  %v589_v47 = vld [vmem:[%s1625_s5 + $0x8] sm:$0xff]  ;;  %s1108_s27 = sshll.u32 %s380_s25, 5 }
  0x39   : > { %v391_v2 = vld [vmem:[%s387_s12 + $0x18] sm:$0xff]  ;;  %v390_v3 = vld [vmem:[%s387_s12 + $0x10] sm:$0xff]  ;;  %v389_v4 = vld [vmem:[%s387_s12 + $0x8] sm:$0xff]  ;;  %s382_s28 = scalar_lea.vmem [#allocation7], %s1108_s27  ;;  %s1580_s26 = scalar_lea.sflag [#allocation4], %s380_s25 }
  0x3a   : > { %539 = vmatprep.subr.mxu1 %v391_v2  ;;  %v388_v5 = vld [vmem:[%s387_s12] sm:$0xff]  ;;  %443 = vmatprep.subr.mxu0 %v391_v2  ;;  %s1016_s30 = sshll.u32 %s382_s28, 4  ;;  %s1127_s12 = sshll.u32 %s1434_s17, 9  ;;  %s1573_s30 = int_to_ptr.vmem [resolvable:$true] %s1016_s30 }
  0x3b   : > { %540 = vmatpush1.msra.mxu1 %v390_v3  ;;  %444 = vmatpush1.msra.mxu0 %v390_v3  ;;  %s1578_s21 = scalar_lea.hbm %s1630_s10, %s1127_s12  ;;  %s1279_s17 = scalar_lea.vmem %s1573_s30, 512 }
  0x3c   : > { %541 = vmatprep.subr.mxu1 %v389_v4  ;;  %1111 = vmatmul.mubr.msk.f32.vlgmr.msra.gmra.mxu0 %vm406_vm0, %v392_v6  ;;  %p1280_p10 = scmp.ne.s32.totalorder %s1573_s30, %s1279_s17  ;;  %s1285_s27 = scalar_lea.vmem %s1284_s11, 1024 }
  0x3d   : > { %542 = vmatpush1.msra.mxu1 %v388_v5  ;;  %483 = vmatprep.mubr.f32.mxu0 %v1353_v0  ;;  %p1286_p11 = scmp.lt.s32.totalorder %s1573_s30, %s1284_s11  ;;  %p1287_p0 = scmp.lt.s32.totalorder %s1285_s27, %s1279_s17 }
  0x3e   : > { %1113 = vmatmul.mubr.msk.f32.vlgmr.msra.gmra.mxu1 %vm504_vm1, %v490_v7  ;;  %636 = vmatprep.subr.mxu0 %v391_v2  ;;  %p1281_p12 = pnand %p1280_p10, %p1451_p5 }
  0x3f   : > { %581 = vmatprep.mubr.f32.mxu1 %v1353_v0  ;;  %637 = vmatpush1.msra.mxu0 %v390_v3  ;;  %p1288_p1 = por %p1287_p0, %p1286_p11 }
  0x40   : > { %1112 = vmatmul.mubr.msk.f32.gmra.mxu0 %vm406_vm0, %v393_v10  ;;  %496 = vperm.xlu0 %1209, %v492_v12   ;;  %v721_v10 = vld [vmem:[#allocation5] sm:$0xff]  ;;  %p1282_p8 = pneg %p1281_p12 }
  0x41   : > { %672 = vmatprep.mubr.f32.mxu0 %v1353_v0  ;;  %398 = vperm.xlu1 %1210, %v394_v13  }
  0x42   : > { %1114 = vmatmul.mubr.msk.f32.gmra.mxu1 %vm504_vm1, %v491_v11  ;;  %638 = vmatprep.subr.mxu0 %v389_v4  ;;  %p1289_p3 = pnand %p1288_p1, %p1282_p8 }
  0x43   : > { %639 = vmatpush1.msra.mxu0 %v388_v5 }
  0x44   : > { %1115 = vmatmul.mubr.msk.f32.vlgmr.msra.gmra.mxu0 %vm504_vm1, %v588_v46  ;;  %v821_v46 = vld [vmem:[#allocation2 + $0x8] sm:$0xff] }
  0x45   : > { %678 = vmatprep.mubr.f32.mxu0 %v1353_v0 }
  0x48   : > { %1116 = vmatmul.mubr.msk.f32.gmra.mxu0 %vm504_vm1, %v589_v47 }
  0xb1   : > { %v502_v14 = vpop.permute.xlu0 %501  ;;  %v404_v20 = vpop.permute.xlu1 %403 }
  0xbb   : > { %v497_v15 = vpop.permute.xlu0 %496 }
  0xbc   : > { %v399_v34 = vpop.permute.xlu1 %398 }
  0xfc   : > { %v479_v16 = vpop.f32.mrf.mxu0 }
  0xfd   : > { %v480_v39 = vadd.f32 %v479_v16, %v399_v34 }
  0xfe   : > { %v577_v17 = vpop.f32.mrf.mxu1  ;;  %v481_v18 = vpop.f32.mrf.mxu0 }
  0xff   : > { %v578_v19 = vadd.f32 %v577_v17, %v497_v15  ;;  %v482_v40 = vadd.f32 %v481_v18, %v399_v34  ;;  %v685_v44 = vmul.f32 %v480_v39, %v480_v39 }
 0x100   : > { %v579_v21 = vpop.f32.mrf.mxu1  ;;  %v485_v22 = vpop.f32.mrf.mxu0 }
 0x101   : > { %v580_v23 = vadd.f32 %v579_v21, %v497_v15  ;;  %v703_v24 = vmul.f32 %v578_v19, %v578_v19  ;;  %v486_v29 = vadd.f32 %v485_v22, %v404_v20  ;;  %v686_v43 = vmul.f32 %v482_v40, %v482_v40 }
 0x102   : > { %v583_v25 = vpop.f32.mrf.mxu1  ;;  %v487_v26 = vpop.f32.mrf.mxu0 }
 0x103   : > { %v704_v27 = vmul.f32 %v580_v23, %v580_v23  ;;  %v584_v28 = vadd.f32 %v583_v25, %v502_v14  ;;  %v488_v30 = vadd.f32 %v487_v26, %v404_v20  ;;  %v687_v37 = vmul.f32 %v486_v29, %v486_v29 }
 0x104   : > { %v585_v31 = vpop.f32.mrf.mxu1  ;;  %v689_v45 = vadd.f32 %v686_v43, %v685_v44  ;;  %v674_v5 = vpop.f32.mrf.mxu0 }
 0x105   : > { %v586_v32 = vadd.f32 %v585_v31, %v502_v14  ;;  %v707_v33 = vadd.f32 %v704_v27, %v703_v24  ;;  %v705_v35 = vmul.f32 %v584_v28, %v584_v28  ;;  %v688_v38 = vmul.f32 %v488_v30, %v488_v30  ;;  %v590_v31 = vld [vmem:[%s1626_s6] sm:$0xff] }
 0x106   : > { %v676_v6 = vpop.f32.mrf.mxu0 }
 0x107   : > { %v706_v36 = vmul.f32 %v586_v32, %v586_v32  ;;  %708 = vadd.xlane.f32.xlu1 %v707_v33  ;;  %v692_v42 = vadd.f32 %v688_v38, %v687_v37  ;;  %v820_v33 = vld [vmem:[#allocation2] sm:$0xff] }
 0x108   : > { %v680_v7 = vpop.f32.mrf.mxu0 }
 0x109   : > { %v710_v41 = vadd.f32 %v706_v36, %v705_v35 }
 0x10a   : > { %v682_v8 = vpop.f32.mrf.mxu0 }
 0x10b   : > { %711 = vadd.xlane.f32.xlu0 %v710_v41 }
 0x10f   : > { %693 = vadd.xlane.f32.xlu0 %v692_v42 }
 0x113   : > { %690 = vadd.xlane.f32.xlu0 %v689_v45 }
 0x190   : > { %v709_v48 = vpop.xlane.xlu1 %708 }
 0x191   : > { %v713_v49 = vmax.f32 %v709_v48, 1e-24 }
 0x193   : > { %1211 = vrsqrt.f32 %v713_v49 }
 0x194   : > { %v712_v50 = vpop.xlane.xlu0 %711 }
 0x195   : > { %v714_v51 = vmax.f32 %v712_v50, 1e-24 }
 0x197   : > { %1213 = vrsqrt.f32 %v714_v51 }
 0x198   : > { %v694_v52 = vpop.xlane.xlu0 %693 }
 0x199   : > { %v696_v53 = vmax.f32 %v694_v52, 1e-24 }
 0x19b   : > { %1215 = vrsqrt.f32 %v696_v53 }
 0x19c   : > { %v691_v54 = vpop.xlane.xlu0 %690 }
 0x19d   : > { %v695_v55 = vmax.f32 %v691_v54, 1e-24 }
 0x19f   : > { %1217 = vrsqrt.f32 %v695_v55 }
 0x1a0   : > { %v1212_v56 = vpop.eup %1211 }
 0x1a1   : > { %v718_v60 = vmul.f32 %v1212_v56, %v580_v23  ;;  %v717_v63 = vmul.f32 %v1212_v56, %v578_v19 }
 0x1a4   : > { %v1214_v57 = vpop.eup %1213 }
 0x1a5   : > { %v720_v58 = vmul.f32 %v1214_v57, %v586_v32  ;;  %v719_v59 = vmul.f32 %v1214_v57, %v584_v28  ;;  %v904_v32 = vld [vmem:[%s1628_s8 + $0x8] sm:$0xff] }
 0x1a7   : > { %751 = vmatprep.subr.mxu0 %v720_v58  ;;  %1139 = vmatprep.subr.mxu1 %v720_v58 }
 0x1a8   : > { %v1216_v61 = vpop.eup %1215  ;;  %752 = vmatpush1.xpose.msra.mxu0 %v719_v59  ;;  %1141 = vmatpush1.xpose.msra.mxu1 %v719_v59 }
 0x1a9   : > { %753 = vmatprep.subr.mxu0 %v718_v60  ;;  %1140 = vmatprep.subr.mxu1 %v718_v60  ;;  %v702_v62 = vmul.f32 %v1216_v61, %v488_v30  ;;  %v701_v3 = vmul.f32 %v1216_v61, %v486_v29  ;;  %v591_v29 = vld [vmem:[%s1626_s6 + $0x8] sm:$0xff]  ;;  %v903_v30 = vld [vmem:[%s1628_s8] sm:$0xff] }
 0x1ab   : > { %792 = vmatprep.mubr.f32.mxu1 %v702_v62 }
 0x1ac   : > { %v1218_v1 = vpop.eup %1217  ;;  %754 = vmatpush1.xpose.msra.mxu0 %v717_v63  ;;  %1142 = vmatpush1.xpose.msra.mxu1 %v717_v63 }
 0x1ad   : > { %v700_v2 = vmul.f32 %v1218_v1, %v482_v40  ;;  %v699_v4 = vmul.f32 %v1218_v1, %v480_v39 }
 0x1af   : > { %787 = vmatprep.mubr.f32.mxu0 %v700_v2  ;;  %793 = vmatmul.mubr.f32.vlgmr.msra.gmra.mxu1 %v701_v3 }
 0x1b0   : > { %788 = vmatmul.mubr.f32.vlgmr.msra.gmra.mxu0 %v699_v4  ;;  %985 = vmatprep.mubr.f32.mxu1 %v1353_v0 }
 0x1b1   : > { %1136 = vmatprep.mubr.msk.f32.mxu0 %vm504_vm1, %v820_v33 }
 0x26f   : > { %v794_v11 = vpop.f32.mrf.mxu1 }
 0x270   : > { %v795_v12 = vadd.f32 %v794_v11, %v722_v9  ;;  %v789_v13 = vpop.f32.mrf.mxu0 }
 0x271   : > { %v790_v14 = vadd.f32 %v789_v13, %v721_v10  ;;  %v796_v15 = vpop.f32.mrf.mxu1 }
 0x272   : > { %v791_v16 = vpop.f32.mrf.mxu0  ;;  %v801_v17 = vsel %vm504_vm1, %v795_v12, -inf }
 0x273   : > { %802 = vmax.xlane.f32.xlu1 %v801_v17  ;;  %v798_v18 = vsel %vm504_vm1, %v790_v14, -inf }
 0x274   : > { %799 = vmax.xlane.f32.xlu0 %v798_v18 }
 0x2fc   : > { %v803_v19 = vpop.xlane.xlu1 %802 }
 0x2fd   : > { %v805_v20 = vsub.f32 %v795_v12, %v803_v19  ;;  %v800_v21 = vpop.xlane.xlu0 %799 }
 0x2fe   : > { %v804_v22 = vsub.f32 %v790_v14, %v800_v21 }
 0x2ff   : > { %v808_v23 = vmul.f32 1.442695, %v805_v20 }
 0x300   : > { %v806_v24 = vmul.f32 1.442695, %v804_v22 }
 0x301   : > { %1219 = vpow2.f32 %v808_v23 }
 0x302   : > { %1221 = vpow2.f32 %v806_v24 }
 0x30e   : > { %v1220_v25 = vpop.eup %1219 }
 0x30f   : > { %v1222_v26 = vpop.eup %1221  ;;  %v813_v27 = vsel %vm504_vm1, %v1220_v25, 0.0 }
 0x310   : > { %814 = vadd.xlane.f32.xlu1 %v813_v27  ;;  %v810_v28 = vsel %vm504_vm1, %v1222_v26, 0.0 }
 0x311   : > { %811 = vadd.xlane.f32.xlu0 %v810_v28 }
 0x321   : > { %599 = vperm.xlu1 %1210, %v591_v29  }
 0x325   : > { %907 = vperm.xlu1 %1210, %v903_v30  }
 0x327   : > { %594 = vperm.xlu0 %1209, %v590_v31  }
 0x329   : > { %912 = vperm.xlu1 %1210, %v904_v32  }
 0x399   : > { %v815_v34 = vpop.xlane.xlu1 %814 }
 0x39a   : > { %1223 = vrcp.f32 %v815_v34  ;;  %v812_v35 = vpop.xlane.xlu0 %811 }
 0x39b   : > { %1225 = vrcp.f32 %v812_v35 }
 0x39d   : > { %v600_v36 = vpop.permute.xlu1 %599 }
 0x39e   : > { %v681_v37 = vadd.f32 %v680_v7, %v600_v36  ;;  %v683_v38 = vadd.f32 %v682_v8, %v600_v36 }
 0x3a0   : > { %949 = vmatprep.subr.mxu1 %v683_v38 }
 0x3a1   : > { %950 = vmatpush1.msra.mxu1 %v681_v37  ;;  %v908_v49 = vpop.permute.xlu1 %907 }
 0x3a2   : > { %v595_v39 = vpop.permute.xlu0 %594 }
 0x3a3   : > { %v675_v40 = vadd.f32 %v674_v5, %v595_v39  ;;  %v677_v41 = vadd.f32 %v676_v6, %v595_v39 }
 0x3a5   : > { %951 = vmatprep.subr.mxu1 %v677_v41  ;;  %v913_v54 = vpop.permute.xlu1 %912 }
 0x3a6   : > { %952 = vmatpush1.msra.mxu1 %v675_v40 }
 0x3a7   : > { %v1224_v42 = vpop.eup %1223 }
 0x3a8   : > { %v1226_v43 = vpop.eup %1225  ;;  %v819_v44 = vmul.f32 %v1224_v42, %v1220_v25 }
 0x3a9   : > { %v818_v45 = vmul.f32 %v1226_v43, %v1222_v26 }
 0x3aa   : > { %1132 = vmatprep.subr.mxu0 %v819_v44 }
 0x3ab   : > { %1133 = vmatpush3.msra.mxu0 %v819_v44 }
 0x3ac   : > { %1134 = vmatprep.subr.mxu0 %v818_v45 }
 0x3ad   : > { %1135 = vmatpush3.msra.mxu0 %v818_v45 }
 0x3ae   : > { %1137 = vmatmul.mubr.msk.f32.vlgmr.msra.gmra.mxu0 %vm504_vm1, %v821_v46 }
 0x46e   : > { %v1138_v47 = vpop.f32.mrf.mxu0 }
 0x470   : > { %v894_v48 = vpop.f32.mrf.mxu0 }
 0x471   : > { %1119 = vmatmul.mubr.msk.f32.vlgmr.msra.gmra.mxu1 %vm504_vm1, %v894_v48 }
 0x472   : > { %991 = vmatprep.mubr.f32.mxu1 %v1353_v0 }
 0x475   : > { %1120 = vmatmul.mubr.msk.f32.gmra.mxu1 %vm504_vm1, %v1138_v47 }
 0x531   : > { %v987_v50 = vpop.f32.mrf.mxu1 }
 0x532   : > { %v988_v51 = vadd.f32 %v987_v50, %v908_v49 }
 0x533   : > { %v989_v52 = vpop.f32.mrf.mxu1 }
 0x534   : > { %998 = vst [vmem:[%s382_s28] sm:$0xff] %v988_v51  ;;  %v990_v53 = vadd.f32 %v989_v52, %v908_v49 }
 0x535   : > { %v993_v55 = vpop.f32.mrf.mxu1 }
 0x536   : > { %999 = vst [vmem:[%s382_s28 + $0x8] sm:$0xff] %v990_v53  ;;  %v994_v56 = vadd.f32 %v993_v55, %v913_v54 }
 0x537   : > { %v995_v0 = vpop.f32.mrf.mxu1 }
 0x538   : > { %1000 = vst [vmem:[%s382_s28 + $0x10] sm:$0xff] %v994_v56  ;;  %v996_v57 = vadd.f32 %v995_v0, %v913_v54 }
 0x53a   : > { %1001 = vst [vmem:[%s382_s28 + $0x18] sm:$0xff] %v996_v57 }
 0x53b   : > { %1292 = shalt.err (!%p1289_p3)
}
 0x53c   : > { %s1293_s25 = scalar_lea.hbm %s1578_s21, 512  ;;  %s1297_s18 = scalar_lea.hbm %s1630_s10, 1024 }
 0x53d   : > { %p1294_p2 = scmp.ne.s32.totalorder %s1578_s21, %s1293_s25  ;;  %p1298_p7 = scmp.lt.s32.totalorder %s1578_s21, %s1630_s10 }
 0x53e   : > { %p1299_p6 = scmp.lt.s32.totalorder %s1297_s18, %s1293_s25 }
 0x53f   : > { %p1295_p4 = pnand %p1294_p2, %p1451_p5 }
 0x540   : > { %p1300_p9 = por %p1299_p6, %p1298_p7 }
 0x541   : > { %p1296_p13 = pneg %p1295_p4 }
 0x543   : > { %p1301_p10 = pnand %p1300_p9, %p1296_p13 }
 0x545   : > { %1304 = shalt.err (!%p1301_p10)
}
 0x546   : > { %s1356_s17 = smov 256   ;;  %s1357_s11 = smov 16  }
 0x547   : > { %1151 = dma.vmem_to_hbm [thread:$0]  (%p1451_p5), %s1573_s30, 512, %s1578_s21, %s1580_s26, %s1356_s17, %s1356_s17, %s1357_s11  }
 0x548 PF: > { %p1168_p12 = scmp.ge.s32.totalorder %s1347_s16, 2  ;;  %s1031_s27 = sand.u32 1, %s1335_s13  }
 0x549   : > { %p1640_p8 = scmp.ne.s32.totalorder %s1633_s24, 0  ;;  %s1032_s25 = scalar_lea.sflag [#allocation4], %s1031_s27 }
 0x54b   : > { %p1161_p11 = pnand %p1168_p12, %p1640_p8 }
 0x54d   : > { %p1162_p0 = pneg %p1161_p11 }
 0x54f   : > { %1330 = dma.done.wait (%p1162_p0), %s1032_s25, 512  }
 0x550   : > { %1332 = vsyncadd (%p1162_p0), %s1032_s25, 4294966784  ;;  %p22_p1 = scmp.ge.s32.totalorder %s1438_s19, 4   ;;  %s1641_s13 = smov %s1339_s14 }
 0x551   : > { %s1642_s14 = smov %s1343_s15  ;;  %s1643_s15 = smov %s1449_s22 }
 0x552   : > { %s1644_s16 = smov %s1438_s19  ;;  %24 = sbr.rel (!%p22_p1) target bundleno = 5 (0x5), region = 104 }
 0x557   :  { %1037 = vsyncpa [#allocation3], 1 }
 0x558   :  { %1039 = vsyncpa [#allocation3 + $0x1], 1 }
 0x559   :  { %1040 = vsyncpa [#allocation6], 1 }
 0x55a   :  { %1041 = vsyncpa [#allocation4], 1 }
 0x55b   :  { %1043 = vsyncpa [#allocation4 + $0x1], 1 }

</bundles_post_ra>
